<compile_context>
chip_gen: v7x
topology: tpu7x:2x2x1
jax: 0.10.0
libtpu: 0.0.40
codegen_flags: <defaults>
</compile_context>

<pallas_src>
import math

import jax
import jax.numpy as jnp
from jax import lax
from jax.experimental import pallas as pl
from jax.experimental.pallas import tpu as pltpu

_LANES = 128
_MIN_TILE = 8 * _LANES  # 1024 px: keeps the block's second-minor dim a multiple of 8


def _round_up(a, b):
    return -(-a // b) * b


def _voxel_f1_stats_kernel(x_ref, gt_ref, out_ref):
    # x_ref  : (1, C, tR, 128)    logits tile (any float dtype)
    # gt_ref : (1, 1, tR, 128)    integer label tile (any int dtype)
    # out_ref: (1, 1, 3, C, 128)  f32 accumulator {tp, sum_p, count}; resident across
    #                             the spatial grid axis (index_map ignores that axis).
    @pl.when(pl.program_id(2) == 0)
    def _init():
        out_ref[...] = jnp.zeros_like(out_ref)

    x = x_ref[0].astype(jnp.float32)       # (C, tR, L); upcast right after load
    gt = gt_ref[0, 0].astype(jnp.int32)    # (tR, L)

    # Numerically-stable softmax over channels. All elementwise work is on full
    # (tR, 128) spatial slabs -> full vreg packing even when C < 8.
    m = jnp.max(x, axis=0, keepdims=True)                # (1, tR, L)
    e = jnp.exp(x - m)                                   # (C, tR, L)  (EUP)
    denom = jnp.sum(e, axis=0, keepdims=True)            # (1, tR, L)
    r = pl.reciprocal(denom, approx=True)                # EUP vrcp (free slot)
    r = r * (2.0 - denom * r)                            # one Newton step -> ~f32 exact
    p = e * r                                            # (C, tR, L)

    C, tR, L = p.shape
    class_ids = lax.broadcasted_iota(jnp.int32, (C, tR, L), 0)
    onehot = (class_ids == gt[None]).astype(jnp.float32)
    # NOTE: labels outside [0, C) (the wrapper's spatial padding value C) give an
    # all-zero one-hot column: they contribute only to sum_p (corrected in wrapper).

    out_ref[0, 0, 0] += jnp.sum(p * onehot, axis=1)      # tp      (C, L)
    out_ref[0, 0, 1] += jnp.sum(p, axis=1)               # sum_p   (C, L)
    out_ref[0, 0, 2] += jnp.sum(onehot, axis=1)          # count   (C, L)


def voxel_f1_loss(x, y, *, smooth=1.0, do_bg=True, clip_tp=None,
                  batch_dice=False, tile_spatial=None):
    """x: (B, C, *spatial) float logits; y: (B, 1, *spatial) or (B, *spatial) int labels."""
    B, C = int(x.shape[0]), int(x.shape[1])
    S = math.prod(int(d) for d in x.shape[2:])
    L = _LANES

    if tile_spatial is None:
        # ~1 MiB of logits per spatial tile (BlockSpec double-buffers it); the f32
        # intermediates stay comfortably inside the 32 MiB scoped-VMEM default.
        itemsize = x.dtype.itemsize
        tile_spatial = ((1 << 20) // (C * itemsize)) // _MIN_TILE * _MIN_TILE
        tile_spatial = max(_MIN_TILE, min(65536, tile_spatial))

    # Spatial tile T (in pixels): whole image if it fits, otherwise a multiple of 8*128
    # so the x-block's second-minor dim satisfies the (8, 128) layout constraint.
    S128 = _round_up(S, L)
    if S128 <= tile_spatial:
        T = S128
    else:
        T = max(_MIN_TILE, (tile_spatial // _MIN_TILE) * _MIN_TILE)
    NS_total = _round_up(S, T) // T

    # Megacore for B == 1: split spatial tiles onto a second "parallel" grid axis with
    # per-partition accumulators reduced in the wrapper.
    NP = 2 if (B == 1 and NS_total >= 2) else 1
    NS_total = _round_up(NS_total, NP)
    NS = NS_total // NP
    S_pad = NS_total * T
    pad = S_pad - S

    x3 = x.reshape(B, C, S)        # keep caller dtype (bf16 halves dominant HBM traffic)
    y3 = y.reshape(B, S)           # keep caller int dtype (int16/int8 labels fine)
    if pad:
        # TODO(synk): in-kernel lane masking would avoid this pad copy for ragged S.
        x3 = jnp.pad(x3, ((0, 0), (0, 0), (0, pad)))
        y3 = jnp.pad(y3, ((0, 0), (0, pad)), constant_values=C)  # out-of-range label

    R = S_pad // L
    tR = T // L
    x4 = x3.reshape(B, C, R, L)
    gt4 = y3.reshape(B, 1, R, L)

    bytes_accessed = (x4.size * x4.dtype.itemsize
                      + gt4.size * gt4.dtype.itemsize
                      + B * NP * 3 * C * L * 4)
    cost = pl.CostEstimate(flops=10 * B * C * S_pad,
                           transcendentals=B * (C + 1) * S_pad,
                           bytes_accessed=int(bytes_accessed))

    stats = pl.pallas_call(
        _voxel_f1_stats_kernel,
        out_shape=jax.ShapeDtypeStruct((B, NP, 3, C, L), jnp.float32),
        grid_spec=pltpu.PrefetchScalarGridSpec(
            num_scalar_prefetch=0,
            grid=(B, NP, NS),
            in_specs=[
                pl.BlockSpec((1, C, tR, L), lambda b, p, s: (b, 0, p * NS + s, 0)),
                pl.BlockSpec((1, 1, tR, L), lambda b, p, s: (b, 0, p * NS + s, 0)),
            ],
            out_specs=pl.BlockSpec((1, 1, 3, C, L), lambda b, p, s: (b, p, 0, 0, 0)),
        ),
        compiler_params=pltpu.CompilerParams(
            dimension_semantics=("parallel", "parallel", "arbitrary")),
        cost_estimate=cost,
    )(x4, gt4)

    sums = stats.sum(axis=(1, -1))            # (B, 3, C) f32, tiny
    tp, sum_p, count = sums[:, 0], sums[:, 1], sums[:, 2]
    if pad:
        sum_p = sum_p - pad / C               # padded pixels (x == 0) have uniform softmax 1/C
    fp = sum_p - tp
    fn = count - tp

    if batch_dice:
        # TODO(synk): ddp AllGatherGrad of tp/fp/fn not implemented; single-device only.
        tp, fp, fn = tp.sum(0), fp.sum(0), fn.sum(0)
    if clip_tp is not None:
        tp = jnp.clip(tp, clip_tp)

    nominator = 2.0 * tp
    denominator = 2.0 * tp + fp + fn
    dc = (nominator + smooth) / jnp.clip(denominator + smooth, 1e-8)
    if not do_bg:
        dc = dc[1:] if batch_dice else dc[:, 1:]
    return 1.0 - dc.mean()


def _reference_loss(x, y, *, smooth=1.0, do_bg=True, clip_tp=None, batch_dice=False):
    # Pure-JAX mirror of the PyTorch forward.
    B, C = x.shape[0], x.shape[1]
    p = jax.nn.softmax(x.astype(jnp.float32), axis=1).reshape(B, C, -1)
    onehot = jax.nn.one_hot(y.reshape(B, -1).astype(jnp.int32), C, axis=1,
                            dtype=jnp.float32)
    axes = (0, 2) if batch_dice else (2,)
    tp = jnp.sum(p * onehot, axis=axes)
    fp = jnp.sum(p * (1.0 - onehot), axis=axes)
    fn = jnp.sum((1.0 - p) * onehot, axis=axes)
    if clip_tp is not None:
        tp = jnp.clip(tp, clip_tp)
    dc = (2.0 * tp + smooth) / jnp.clip(2.0 * tp + fp + fn + smooth, 1e-8)
    if not do_bg:
        dc = dc[1:] if batch_dice else dc[:, 1:]
    return 1.0 - dc.mean()


if __name__ == "__main__":
    key = jax.random.PRNGKey(0)
    k1, k2, k3, k4, k5, k6, k7, k8 = jax.random.split(key, 8)

    # Test 1: spec shapes — f32 logits, int32 labels, single spatial tile.
    B, C, H, W = 2, 4, 16, 16
    x = jax.random.normal(k1, (B, C, H, W), dtype=jnp.float32)
    y = jax.random.randint(k2, (B, 1, H, W), 0, C, dtype=jnp.int32)
    loss = jax.block_until_ready(voxel_f1_loss(x, y))
    ref = jax.block_until_ready(_reference_loss(x, y))
    assert jnp.allclose(loss, ref, atol=1e-4, rtol=1e-4), (loss, ref)

    # Test 2: bf16 logits + int16 labels, ragged spatial (padding correction), batch_dice.
    B, C, H, W = 2, 4, 20, 20
    x = jax.random.normal(k3, (B, C, H, W), dtype=jnp.float32).astype(jnp.bfloat16)
    y = jax.random.randint(k4, (B, H, W), 0, C, dtype=jnp.int32).astype(jnp.int16)
    loss = jax.block_until_ready(voxel_f1_loss(x, y, batch_dice=True))
    ref = jax.block_until_ready(_reference_loss(x, y, batch_dice=True))
    assert jnp.allclose(loss, ref, atol=1e-4, rtol=1e-4), (loss, ref)

    # Test 3: multi-tile spatial accumulation (grid=(2,1,2)), ragged S, do_bg=False, clip_tp.
    B, C, H, W = 2, 4, 50, 40
    x = jax.random.normal(k5, (B, C, H, W), dtype=jnp.float32)
    y = jax.random.randint(k6, (B, 1, H, W), 0, C, dtype=jnp.int32)
    loss = jax.block_until_ready(
        voxel_f1_loss(x, y, do_bg=False, clip_tp=0.1, tile_spatial=1024))
    ref = jax.block_until_ready(_reference_loss(x, y, do_bg=False, clip_tp=0.1))
    assert jnp.allclose(loss, ref, atol=1e-4, rtol=1e-4), (loss, ref)

    # Test 4: B == 1 megacore split path (grid=(1,2,1)), odd C, ragged S.
    B, C, H, W = 1, 3, 40, 40
    x = jax.random.normal(k7, (B, C, H, W), dtype=jnp.float32)
    y = jax.random.randint(k8, (B, 1, H, W), 0, C, dtype=jnp.int32)
    loss = jax.block_until_ready(voxel_f1_loss(x, y, tile_spatial=1024))
    ref = jax.block_until_ready(_reference_loss(x, y))
    assert jnp.allclose(loss, ref, atol=1e-4, rtol=1e-4), (loss, ref)

    print("KERNEL_OK")
</pallas_src>

<mosaic_0001>
module attributes {stable_mosaic.version = 11 : i64} {
  func.func @_voxel_f1_stats_kernel(%arg0: i32, %arg1: i32, %arg2: i32, %arg3: memref<1x4x2x128xf32, #tpu.memory_space<vmem>>, %arg4: memref<1x1x2x128xi32, #tpu.memory_space<vmem>>, %arg5: memref<1x1x3x4x128xf32, #tpu.memory_space<vmem>>) attributes {dimension_semantics = [#tpu.dimension_semantics<parallel>, #tpu.dimension_semantics<parallel>, #tpu.dimension_semantics<arbitrary>], iteration_bounds = array<i64: 2, 1, 1>, scalar_prefetch = 0 : i64, scratch_operands = 0 : i64, tpu.core_type = #tpu.core_type<tc>, window_params = [{transform_indices = @transform_0, window_bounds = array<i64: 1, 4, 2, 128>}, {transform_indices = @transform_1, window_bounds = array<i64: 1, 1, 2, 128>}, {transform_indices = @transform_2, window_bounds = array<i64: 1, 1, 3, 4, 128>}]} {
    %c0_i32 = arith.constant 0 : i32
    %0 = arith.cmpi eq, %arg2, %c0_i32 : i32
    %1 = arith.extui %0 : i1 to i32
    %c0_i32_0 = arith.constant 0 : i32
    %2 = arith.cmpi ne, %1, %c0_i32_0 : i32
    scf.if %2 {
      %cst_41 = arith.constant 0.000000e+00 : f32
      %49 = vector.broadcast %cst_41 : f32 to vector<1x1x3x4x128xf32>
      %c0_42 = arith.constant 0 : index
      %c0_43 = arith.constant 0 : index
      %c0_44 = arith.constant 0 : index
      %c0_45 = arith.constant 0 : index
      %c0_46 = arith.constant 0 : index
      %50 = vector.load %arg5[%c0_42, %c0_43, %c0_44, %c0_45, %c0_46] : memref<1x1x3x4x128xf32, #tpu.memory_space<vmem>>, vector<1x1x3x4x128xf32>
      tpu.vector_store %arg5[%c0_42, %c0_43, %c0_44, %c0_45, %c0_46], %49 {strides = array<i32>} : memref<1x1x3x4x128xf32, #tpu.memory_space<vmem>>, vector<1x1x3x4x128xf32>,
    } else {
    }
    %c0 = arith.constant 0 : index
    %c0_1 = arith.constant 0 : index
    %c0_2 = arith.constant 0 : index
    %c0_3 = arith.constant 0 : index
    %3 = vector.load %arg3[%c0, %c0_1, %c0_2, %c0_3] : memref<1x4x2x128xf32, #tpu.memory_space<vmem>>, vector<1x4x2x128xf32>
    %4 = vector.shape_cast %3 : vector<1x4x2x128xf32> to vector<4x2x128xf32>
    %c0_4 = arith.constant 0 : index
    %c0_5 = arith.constant 0 : index
    %c0_6 = arith.constant 0 : index
    %c0_7 = arith.constant 0 : index
    %5 = vector.load %arg4[%c0_4, %c0_5, %c0_6, %c0_7] : memref<1x1x2x128xi32, #tpu.memory_space<vmem>>, vector<1x1x2x128xi32>
    %6 = vector.shape_cast %5 : vector<1x1x2x128xi32> to vector<2x128xi32>
    %cst = arith.constant dense<0xFF800000> : vector<2x128xf32>
    %7 = vector.multi_reduction <maximumf>, %4, %cst [0] : vector<4x2x128xf32> to vector<2x128xf32>
    %8 = vector.shape_cast %7 : vector<2x128xf32> to vector<1x2x128xf32>
    %9 = vector.broadcast %8 : vector<1x2x128xf32> to vector<4x2x128xf32>
    %10 = arith.subf %4, %9 : vector<4x2x128xf32>
    %11 = math.exp %10 : vector<4x2x128xf32>
    %cst_8 = arith.constant dense<0.000000e+00> : vector<2x128xf32>
    %12 = vector.multi_reduction <add>, %11, %cst_8 [0] : vector<4x2x128xf32> to vector<2x128xf32>
    %13 = vector.shape_cast %12 : vector<2x128xf32> to vector<1x2x128xf32>
    %14 = tpu.reciprocal %13 {approx = true} : vector<1x2x128xf32> -> vector<1x2x128xf32>
    %15 = arith.mulf %13, %14 : vector<1x2x128xf32>
    %cst_9 = arith.constant 2.000000e+00 : f32
    %16 = vector.broadcast %cst_9 : f32 to vector<1x2x128xf32>
    %17 = arith.subf %16, %15 : vector<1x2x128xf32>
    %18 = arith.mulf %14, %17 : vector<1x2x128xf32>
    %19 = vector.broadcast %18 : vector<1x2x128xf32> to vector<4x2x128xf32>
    %20 = arith.mulf %11, %19 : vector<4x2x128xf32>
    %21 = tpu.iota {dimensions = array<i32: 0>} : vector<4x2x128xi32>
    %22 = vector.shape_cast %6 : vector<2x128xi32> to vector<1x2x128xi32>
    %23 = vector.broadcast %22 : vector<1x2x128xi32> to vector<4x2x128xi32>
    %24 = arith.cmpi eq, %21, %23 : vector<4x2x128xi32>
    %25 = arith.extui %24 : vector<4x2x128xi1> to vector<4x2x128xi32>
    %26 = arith.sitofp %25 : vector<4x2x128xi32> to vector<4x2x128xf32>
    %c0_10 = arith.constant 0 : index
    %c0_11 = arith.constant 0 : index
    %c0_12 = arith.constant 0 : index
    %c0_13 = arith.constant 0 : index
    %c0_14 = arith.constant 0 : index
    %27 = vector.load %arg5[%c0_10, %c0_11, %c0_12, %c0_13, %c0_14] : memref<1x1x3x4x128xf32, #tpu.memory_space<vmem>>, vector<1x1x1x4x128xf32>
    %28 = vector.shape_cast %27 : vector<1x1x1x4x128xf32> to vector<4x128xf32>
    %29 = arith.mulf %20, %26 : vector<4x2x128xf32>
    %cst_15 = arith.constant dense<0.000000e+00> : vector<4x128xf32>
    %30 = vector.multi_reduction <add>, %29, %cst_15 [1] : vector<4x2x128xf32> to vector<4x128xf32>
    %31 = arith.addf %28, %30 : vector<4x128xf32>
    %c0_16 = arith.constant 0 : index
    %c0_17 = arith.constant 0 : index
    %c0_18 = arith.constant 0 : index
    %c0_19 = arith.constant 0 : index
    %c0_20 = arith.constant 0 : index
    %32 = vector.load %arg5[%c0_16, %c0_17, %c0_18, %c0_19, %c0_20] : memref<1x1x3x4x128xf32, #tpu.memory_space<vmem>>, vector<1x1x1x4x128xf32>
    %33 = vector.shape_cast %32 : vector<1x1x1x4x128xf32> to vector<4x128xf32>
    %34 = vector.shape_cast %31 : vector<4x128xf32> to vector<1x1x1x4x128xf32>
    tpu.vector_store %arg5[%c0_16, %c0_17, %c0_18, %c0_19, %c0_20], %34 {strides = array<i32>} : memref<1x1x3x4x128xf32, #tpu.memory_space<vmem>>, vector<1x1x1x4x128xf32>,
    %c0_21 = arith.constant 0 : index
    %c0_22 = arith.constant 0 : index
    %c1 = arith.constant 1 : index
    %c0_23 = arith.constant 0 : index
    %c0_24 = arith.constant 0 : index
    %35 = vector.load %arg5[%c0_21, %c0_22, %c1, %c0_23, %c0_24] : memref<1x1x3x4x128xf32, #tpu.memory_space<vmem>>, vector<1x1x1x4x128xf32>
    %36 = vector.shape_cast %35 : vector<1x1x1x4x128xf32> to vector<4x128xf32>
    %cst_25 = arith.constant dense<0.000000e+00> : vector<4x128xf32>
    %37 = vector.multi_reduction <add>, %20, %cst_25 [1] : vector<4x2x128xf32> to vector<4x128xf32>
    %38 = arith.addf %36, %37 : vector<4x128xf32>
    %c0_26 = arith.constant 0 : index
    %c0_27 = arith.constant 0 : index
    %c1_28 = arith.constant 1 : index
    %c0_29 = arith.constant 0 : index
    %c0_30 = arith.constant 0 : index
    %39 = vector.load %arg5[%c0_26, %c0_27, %c1_28, %c0_29, %c0_30] : memref<1x1x3x4x128xf32, #tpu.memory_space<vmem>>, vector<1x1x1x4x128xf32>
    %40 = vector.shape_cast %39 : vector<1x1x1x4x128xf32> to vector<4x128xf32>
    %41 = vector.shape_cast %38 : vector<4x128xf32> to vector<1x1x1x4x128xf32>
    tpu.vector_store %arg5[%c0_26, %c0_27, %c1_28, %c0_29, %c0_30], %41 {strides = array<i32>} : memref<1x1x3x4x128xf32, #tpu.memory_space<vmem>>, vector<1x1x1x4x128xf32>,
    %c0_31 = arith.constant 0 : index
    %c0_32 = arith.constant 0 : index
    %c2 = arith.constant 2 : index
    %c0_33 = arith.constant 0 : index
    %c0_34 = arith.constant 0 : index
    %42 = vector.load %arg5[%c0_31, %c0_32, %c2, %c0_33, %c0_34] : memref<1x1x3x4x128xf32, #tpu.memory_space<vmem>>, vector<1x1x1x4x128xf32>
    %43 = vector.shape_cast %42 : vector<1x1x1x4x128xf32> to vector<4x128xf32>
    %cst_35 = arith.constant dense<0.000000e+00> : vector<4x128xf32>
    %44 = vector.multi_reduction <add>, %26, %cst_35 [1] : vector<4x2x128xf32> to vector<4x128xf32>
    %45 = arith.addf %43, %44 : vector<4x128xf32>
    %c0_36 = arith.constant 0 : index
    %c0_37 = arith.constant 0 : index
    %c2_38 = arith.constant 2 : index
    %c0_39 = arith.constant 0 : index
    %c0_40 = arith.constant 0 : index
    %46 = vector.load %arg5[%c0_36, %c0_37, %c2_38, %c0_39, %c0_40] : memref<1x1x3x4x128xf32, #tpu.memory_space<vmem>>, vector<1x1x1x4x128xf32>
    %47 = vector.shape_cast %46 : vector<1x1x1x4x128xf32> to vector<4x128xf32>
    %48 = vector.shape_cast %45 : vector<4x128xf32> to vector<1x1x1x4x128xf32>
    tpu.vector_store %arg5[%c0_36, %c0_37, %c2_38, %c0_39, %c0_40], %48 {strides = array<i32>} : memref<1x1x3x4x128xf32, #tpu.memory_space<vmem>>, vector<1x1x1x4x128xf32>,
    return
  }
  func.func @transform_0(%arg0: i32, %arg1: i32, %arg2: i32) -> (i32, i32, i32, i32) {
    %c1_i32 = arith.constant 1 : i32
    %0 = arith.muli %arg1, %c1_i32 : i32
    %1 = arith.addi %0, %arg2 : i32
    %c0_i32 = arith.constant 0 : i32
    %c0_i32_0 = arith.constant 0 : i32
    %c0_i32_1 = arith.constant 0 : i32
    return %arg0, %c0_i32, %1, %c0_i32_0 : i32, i32, i32, i32
  }
  func.func @transform_1(%arg0: i32, %arg1: i32, %arg2: i32) -> (i32, i32, i32, i32) {
    %c1_i32 = arith.constant 1 : i32
    %0 = arith.muli %arg1, %c1_i32 : i32
    %1 = arith.addi %0, %arg2 : i32
    %c0_i32 = arith.constant 0 : i32
    %c0_i32_0 = arith.constant 0 : i32
    %c0_i32_1 = arith.constant 0 : i32
    return %arg0, %c0_i32, %1, %c0_i32_0 : i32, i32, i32, i32
  }
  func.func @transform_2(%arg0: i32, %arg1: i32, %arg2: i32) -> (i32, i32, i32, i32, i32) {
    %c0_i32 = arith.constant 0 : i32
    %c0_i32_0 = arith.constant 0 : i32
    %c0_i32_1 = arith.constant 0 : i32
    %c0_i32_2 = arith.constant 0 : i32
    return %arg0, %arg1, %c0_i32, %c0_i32_0, %c0_i32_1 : i32, i32, i32, i32, i32
  }
}

</mosaic_0001>

<bundles_post_ra>
// kernel: tpu_custom_call.1
= control target key start
LH: loop header
LB: loop body
LE: loop exit
PB: predicated region body
PF: predicated region fallthrough
CT: control target
= control target key end

     0   :  { %7 = vsyncpa [#allocation3], 0  ;;  %s1104_s0 = inlined_call_operand.hbm [shape: f32[2,4,2,128], index: 0, kind: input, shape index: {}]   ;;  %s1105_s1 = inlined_call_operand.hbm [shape: s32[2,1,2,128], index: 1, kind: input, shape index: {}]   ;;  %s1106_s2 = inlined_call_operand.hbm [shape: f32[2,1,3,4,128], index: 2, kind: output, shape index: {}]  }
   0x1   :  { %9 = vsyncpa [#allocation3 + $0x1], 0 }
   0x2   :  { %10 = vsyncpa [#allocation6], 0 }
   0x3   :  { %12 = vsyncpa [#allocation6 + $0x1], 0 }
   0x4   :  { %13 = vsyncpa [#allocation4], 0 }
   0x5   :  { %15 = vsyncpa [#allocation4 + $0x1], 0  ;;  %s829_s9 = smov 0   ;;  %s831_s10 = smov 0  }
   0x6   :  { %s833_s11 = smov 0   ;;  %s835_s12 = smov 0  }
   0x7   :  { %s837_s13 = smov 0   ;;  %s839_s14 = smov 0  }
   0x8 LB: > { %s550_s15 = sadd.s32 4294967295, %s804_s14   ;;  %s551_s16 = sadd.s32 4294967294, %s804_s14   ;;  %s804_s14 = sphi %s839_s14, %s21_s14   ;;  %s800_s13 = sphi %s837_s13, %s1125_s13   ;;  %s796_s12 = sphi %s835_s12, %s1124_s12   ;;  %s792_s11 = sphi %s833_s11, %s1123_s11   ;;  %s788_s10 = sphi %s831_s10, %s1122_s10   ;;  %s784_s9 = sphi %s829_s9, %s1121_s9  }
   0x9   : > { %s40_s17 = sadd.s32 1, %s800_s13  ;;  %s51_s18 = sadd.s32 1, %s792_s11 }
   0xa   : > { %p42_p0 = scmp.ge.s32.totalorder %s40_s17, 2  ;;  %p58_p1 = scmp.ne.s32.totalorder %s792_s11, %s788_s10 }
   0xb   : > { %p59_p2 = scmp.eq.s32.totalorder %s804_s14, 0  ;;  %p64_p3 = scmp.ne.s32.totalorder %s788_s10, %s784_s9 }
   0xc   : > { %s1127_s17 = smov (%p42_p0, %s40_s17), 0  ;;  %p65_p5 = scmp.eq.s32.totalorder %s550_s15, 0 }
   0xd   : > { %p870_p4 = por %p59_p2, %p58_p1  ;;  %s46_s20 = ssub.s32 %s800_s13, %s1127_s17 }
   0xe   : > { %p120_p6 = scmp.eq.s32.totalorder %s550_s15, 1  ;;  %p49_p7 = scmp.eq.s32.totalorder %s46_s20, 0 }
   0xf   : > { %p876_p8 = por %p65_p5, %p64_p3  ;;  %p126_p10 = scmp.eq.s32.totalorder %s551_s16, 1 }
  0x10   : > { %p880_p9 = por %p120_p6, %p58_p1  ;;  %p593_p13 = scmp.lt.s32.totalorder %s804_s14, 2 }
  0x11   : > { %s1110_s21 = scalar_select %p876_p8, 1, 0 }
  0x12   : > { %s1111_s22 = scalar_select %p880_p9, 1, 0 }
  0x13   : > { %s885_s23 = scalar_select %p49_p7, %s792_s11, %s51_s18  }
  0x14   : > { %p887_p11 = por %p126_p10, %p64_p3  ;;  %s894_s25 = sand.u32 1, %s792_s11  }
  0x15   : > { %s554_s26 = sshll.u32 %s894_s25, 3  ;;  %s573_s27 = sshll.u32 %s800_s13, 7 }
  0x16   : > { %s1112_s24 = scalar_select %p887_p11, 1, 0 }
  0x17   : > { %s901_s30 = scalar_lea.hbm %s1104_s0, %s573_s27  ;;  %s150_s3 = scalar_lea.vmem [#allocation2], %s554_s26 }
  0x18   : > { %s159_s4 = sshll.u32 %s150_s3, 4  ;;  %p907_p0 = pnand %p593_p13, %p870_p4  ;;  %s903_s4 = int_to_ptr.vmem [resolvable:$true] %s159_s4 }
  0x19   : > { %s147_s6 = scalar_lea.sflag [#allocation3], %s894_s25  ;;  %s658_s7 = scalar_lea.hbm %s901_s30, 128 }
  0x1a   : > { %p659_p2 = scmp.ne.s32.totalorder %s901_s30, %s658_s7  ;;  %p660_p3 = pneg %p907_p0 }
  0x1b   : > { %s663_s16 = scalar_lea.hbm %s1104_s0, 256  ;;  %p664_p4 = scmp.lt.u32.totalorder %s901_s30, %s1104_s0 }
  0x1c   : > { %p661_p5 = pnand %p660_p3, %p659_p2  ;;  %p665_p7 = scmp.lt.u32.totalorder %s663_s16, %s658_s7 }
  0x1d   : > { %p667_p13 = scmp.lt.u32.totalorder %s658_s7, %s901_s30 }
  0x1e   : > { %p662_p6 = pneg %p661_p5  ;;  %p666_p10 = por %p665_p7, %p664_p4 }
  0x20   : > { %p668_p12 = por %p667_p13, %p666_p10 }
  0x22   : > { %p669_p1 = pnand %p668_p12, %p662_p6 }
  0x24   : > { %672 = shalt.err (!%p669_p1)
}
  0x25   : > { %s673_s20 = scalar_lea.vmem %s903_s4, 128  ;;  %s806_s26 = smov [#allocation2]  }
  0x26   : > { %p674_p2 = scmp.ne.s32.totalorder %s903_s4, %s673_s20  ;;  %s678_s27 = sshll.u32 %s806_s26, 4  ;;  %s679_s27 = int_to_ptr.vmem [resolvable:$false] %s678_s27 }
  0x27   : > { %s680_s28 = scalar_lea.vmem %s679_s27, 256  ;;  %p681_p9 = scmp.lt.s32.totalorder %s903_s4, %s679_s27 }
  0x28   : > { %p676_p5 = pnand %p674_p2, %p660_p3  ;;  %p682_p4 = scmp.lt.s32.totalorder %s680_s28, %s673_s20 }
  0x2a   : > { %p677_p11 = pneg %p676_p5  ;;  %p683_p7 = por %p682_p4, %p681_p9 }
  0x2c   : > { %p684_p10 = pnand %p683_p7, %p677_p11 }
  0x2e   : > { %687 = shalt.err (!%p684_p10)
}
  0x2f   : > { %s807_s29 = smov 32   ;;  %s808_s3 = smov 2  }
  0x30   : > { %585 = dma.hbm_to_vmem [thread:$0]  (!%p907_p0), %s901_s30, 128, %s903_s4, %s147_s6, %s807_s29, %s807_s29, %s808_s3  }
  0x31   : > { %p187_p12 = scmp.lt.s32.totalorder %s804_s14, 3  ;;  %s557_s7 = sshll.u32 %s894_s25, 1 }
  0x32   : > { %s558_s8 = sshll.u32 %s800_s13, 5  ;;  %p1114_p9 = scmp.ge.s32.totalorder %s804_s14, 1 }
  0x33   : > { %s952_s19 = scalar_lea.hbm %s1105_s1, %s558_s8  ;;  %s173_s20 = scalar_lea.vmem [#allocation5], %s557_s7 }
  0x34   : > { %p945_p11 = pnand %p1114_p9, %p187_p12  ;;  %s182_s26 = sshll.u32 %s173_s20, 4  ;;  %s183_s26 = int_to_ptr.vmem [resolvable:$true] %s182_s26 }
  0x35   : > { %s170_s30 = scalar_lea.sflag [#allocation6], %s894_s25  ;;  %s688_s4 = scalar_lea.hbm %s952_s19, 32 }
  0x36   : > { %s1115_s15 = scalar_select %p945_p11, 1, 0 }
  0x37   : > { %p689_p1 = scmp.ne.s32.totalorder %s952_s19, %s688_s4  ;;  %s693_s28 = scalar_lea.hbm %s1105_s1, 64 }
  0x38   : > { %p694_p2 = scmp.lt.u32.totalorder %s952_s19, %s1105_s1  ;;  %p695_p5 = scmp.lt.u32.totalorder %s693_s28, %s688_s4 }
  0x39   : > { %p691_p6 = pnand %p689_p1, %p660_p3  ;;  %p697_p7 = scmp.lt.u32.totalorder %s688_s4, %s952_s19 }
  0x3a   : > { %p696_p4 = por %p695_p5, %p694_p2 }
  0x3b   : > { %p692_p13 = pneg %p691_p6 }
  0x3c   : > { %p698_p10 = por %p697_p7, %p696_p4 }
  0x3e   : > { %p699_p12 = pnand %p698_p10, %p692_p13 }
  0x40   : > { %702 = shalt.err (!%p699_p12)
}
  0x41   : > { %s703_s25 = scalar_lea.vmem %s183_s26, 32  ;;  %s809_s7 = smov [#allocation5]  }
  0x42   : > { %p704_p9 = scmp.ne.s32.totalorder %s183_s26, %s703_s25  ;;  %s708_s8 = sshll.u32 %s809_s7, 4  ;;  %s709_s8 = int_to_ptr.vmem [resolvable:$false] %s708_s8 }
  0x43   : > { %s710_s16 = scalar_lea.vmem %s709_s8, 64  ;;  %p711_p8 = scmp.lt.s32.totalorder %s183_s26, %s709_s8 }
  0x44   : > { %p706_p1 = pnand %p704_p9, %p660_p3  ;;  %p712_p11 = scmp.lt.s32.totalorder %s710_s16, %s703_s25 }
  0x46   : > { %p707_p6 = pneg %p706_p1  ;;  %p713_p2 = por %p712_p11, %p711_p8 }
  0x48   : > { %p714_p5 = pnand %p713_p2, %p707_p6 }
  0x4a   : > { %717 = shalt.err (!%p714_p5)
}
  0x4b   : > { %588 = dma.hbm_to_vmem [thread:$0]  (!%p907_p0), %s952_s19, 32, %s183_s26, %s170_s30  }
  0x4c   : > { %p1116_p13 = scmp.ne.s32.totalorder %s1115_s15, 0 }
  0x4d   : > { %s977_s18 = sand.u32 (!%p1116_p13), 1, %s788_s10   ;;  %p1117_p3 = scmp.ne.s32.totalorder (!%p1116_p13), %s1110_s21, 0 }
  0x4e   : > { %191 = sbr.rel (%p1116_p13) target bundleno = 176 (0xb0), region = 28  ;;  %s560_s20 = sshll.u32 (!%p1116_p13), %s977_s18, 3 }
  0x4f   : > { %s194_s4 = scalar_lea.sflag (!%p1116_p13), [#allocation3], %s977_s18  ;;  %s197_s6 = scalar_lea.vmem (!%p1116_p13), [#allocation2], %s560_s20 }
  0x55   : > { %771 = dma.done.wait (%p1117_p3), %s194_s4, 128  }
  0x56   : > { %773 = vsyncadd (%p1117_p3), %s194_s4, 4294967168  ;;  %s561_s5 = sshll.u32 %s977_s18, 1  ;;  %s203_s15 = scalar_lea.sflag [#allocation6], %s977_s18 }
  0x57   : > { %s206_s19 = scalar_lea.vmem [#allocation5], %s561_s5 }
  0x58   : > { %775 = dma.done.wait (%p1117_p3), %s203_s15, 32  }
  0x59   : > { %777 = vsyncadd (%p1117_p3), %s203_s15, 4294967264  ;;  %s574_s26 = smul.u32 12, %s977_s18  ;;  %v810_v0 = vmov 0.0   ;;  %vm246_vm0 = vcmask 1041408   ;;  %v245_v1 = vld [vmem:[%s206_s19] sm:$0x3] }
  0x5a   : > { %v241_v2 = vld [vmem:[%s197_s6] sm:$0x3]  ;;  %v242_v3 = vld [vmem:[%s197_s6 + $0x2] sm:$0x3]  ;;  %vm281_vm1 = vcmp.eq.s32.totalorder %v245_v1, 0  ;;  %vm282_vm2 = vcmp.eq.s32.totalorder %v245_v1, 1 }
  0x5b   : > { %s992_s30 = scalar_lea.vmem [#allocation7], %s574_s26  ;;  %v243_v4 = vld [vmem:[%s197_s6 + $0x4] sm:$0x3]  ;;  %v244_v5 = vld [vmem:[%s197_s6 + $0x6] sm:$0x3]  ;;  %v997_v6 = vsel %vm281_vm1, 1.0, %v810_v0 }
  0x5c   : > { %238 = vst [vmem:[%s992_s30] sm:$0xf] %v810_v0  ;;  %239 = vst [vmem:[%s992_s30 + $0x4] sm:$0xf] %v810_v0  ;;  %v247_v7 = vsel %vm246_vm0, %v241_v2, -inf  ;;  %v248_v8 = vsel %vm246_vm0, %v242_v3, -inf  ;;  %v249_v9 = vsel %vm246_vm0, %v243_v4, -inf }
  0x5d   : > { %240 = vst [vmem:[%s992_s30 + $0x8] sm:$0xf] %v810_v0  ;;  %v250_v10 = vsel %vm246_vm0, %v244_v5, -inf  ;;  %v251_v11 = vmax.f32 %v247_v7, %v248_v8  ;;  %vm283_vm3 = vcmp.eq.s32.totalorder %v245_v1, 2  ;;  %v1003_v12 = vsel %vm282_vm2, 1.0, %v810_v0  ;;  %s575_s21 = smul.u32 192, %s796_s12 }
  0x5e   : > { %v252_v13 = vmax.f32 %v249_v9, %v250_v10  ;;  %vm284_vm4 = vcmp.eq.s32.totalorder %v245_v1, 3  ;;  %v1005_v14 = vsel %vm283_vm3, 1.0, %v810_v0  ;;  %v381_v16 = vsel %vm246_vm0, %v997_v6, 0.0  ;;  %s435_s27 = sshll.u32 %s992_s30, 4  ;;  %s420_s3 = scalar_lea.sflag [#allocation4], %s977_s18  ;;  %s1053_s27 = int_to_ptr.vmem [resolvable:$true] %s435_s27 }
  0x5f   : > { %v1007_v15 = vsel %vm284_vm4, 1.0, %v810_v0  ;;  %v388_v17 = vsel %vm246_vm0, %v1003_v12, 0.0  ;;  %v395_v18 = vsel %vm246_vm0, %v1005_v14, 0.0  ;;  %v382_v20 = vrot.slane %v381_v16, 4  ;;  %s1051_s29 = scalar_lea.hbm %s1106_s2, %s575_s21  ;;  %s718_s25 = scalar_lea.vmem %s1053_s27, 192 }
  0x60   : > { %v253_v19 = vmax.f32 %v251_v11, %v252_v13  ;;  %v389_v21 = vrot.slane %v388_v17, 4  ;;  %v396_v22 = vrot.slane %v395_v18, 4  ;;  %v402_v23 = vsel %vm246_vm0, %v1007_v15, 0.0  ;;  %p719_p8 = scmp.ne.s32.totalorder %s1053_s27, %s718_s25  ;;  %p1118_p0 = scmp.ne.s32.totalorder %s1111_s22, 0 }
  0x61   : > { %v383_v28 = vadd.f32 %v382_v20, %v381_v16  ;;  %v403_v31 = vrot.slane %v402_v23, 4  ;;  %vm330_vm5 = vcmask 1041409   ;;  %vm332_vm6 = vcmask 1042434   ;;  %s811_s7 = smov [#allocation7]  }
  0x62   : > { %v254_v24 = vsub.f32 %v241_v2, %v253_v19  ;;  %v255_v25 = vsub.f32 %v242_v3, %v253_v19  ;;  %v256_v26 = vsub.f32 %v243_v4, %v253_v19  ;;  %v257_v27 = vsub.f32 %v244_v5, %v253_v19  ;;  %p720_p11 = pnand %p719_p8, %p1118_p0  ;;  %s722_s8 = sshll.u32 %s811_s7, 4  ;;  %s723_s8 = int_to_ptr.vmem [resolvable:$false] %s722_s8 }
  0x63   : > { %v390_v29 = vadd.f32 %v389_v21, %v388_v17  ;;  %v397_v30 = vadd.f32 %v396_v22, %v395_v18  ;;  %v384_v36 = vrot.slane %v383_v28, 2  ;;  %v404_v39 = vadd.f32 %v403_v31, %v402_v23  ;;  %s724_s16 = scalar_lea.vmem %s723_s8, 384  ;;  %p725_p7 = scmp.lt.s32.totalorder %s1053_s27, %s723_s8 }
  0x64   : > { %v258_v32 = vmul.f32 1.442695, %v254_v24  ;;  %v260_v33 = vmul.f32 1.442695, %v255_v25  ;;  %v262_v34 = vmul.f32 1.442695, %v256_v26  ;;  %p721_p4 = pneg %p720_p11  ;;  %p726_p10 = scmp.lt.s32.totalorder %s724_s16, %s718_s25 }
  0x65   : > { %v264_v35 = vmul.f32 1.442695, %v257_v27  ;;  %v391_v37 = vrot.slane %v390_v29, 2  ;;  %v398_v38 = vrot.slane %v397_v30, 2  ;;  %v385_v40 = vadd.f32 %v384_v36, %v383_v28  ;;  %v568_v53 = vld [vmem:[%s992_s30 + $0x8] sm:$0xf] }
  0x66   : > { %648 = vpow2.f32 %v258_v32  ;;  %v405_v43 = vrot.slane %v404_v39, 2  ;;  %vm334_vm7 = vcmask 1043459   ;;  %p727_p12 = por %p726_p10, %p725_p7 }
  0x67   : > { %650 = vpow2.f32 %v260_v33  ;;  %v392_v41 = vadd.f32 %v391_v37, %v390_v29  ;;  %v399_v42 = vadd.f32 %v398_v38, %v397_v30  ;;  %v386_v44 = vrot.slane %v385_v40, 1 }
  0x68   : > { %652 = vpow2.f32 %v262_v34  ;;  %v406_v47 = vadd.f32 %v405_v43, %v404_v39  ;;  %p728_p9 = pnand %p727_p12, %p721_p4 }
  0x69   : > { %654 = vpow2.f32 %v264_v35  ;;  %v393_v45 = vrot.slane %v392_v41, 1  ;;  %v400_v46 = vrot.slane %v399_v42, 1  ;;  %v387_v48 = vadd.f32 %v386_v44, %v385_v40 }
  0x6a   : > { %v407_v51 = vrot.slane %v406_v47, 1 }
  0x6b   : > { %v394_v49 = vadd.f32 %v393_v45, %v392_v41  ;;  %v401_v50 = vadd.f32 %v400_v46, %v399_v42 }
  0x6c   : > { %v408_v54 = vadd.f32 %v407_v51, %v406_v47 }
  0x6d   : > { %v413_v52 = vsel %vm330_vm5, %v394_v49, %v387_v48 }
  0x6e   : > { %v414_v55 = vsel %vm332_vm6, %v401_v50, %v413_v52 }
  0x6f   : > { %v415_v57 = vsel %vm334_vm7, %v408_v54, %v414_v55 }
  0x70   : > { %v649_v56 = vpop.eup %648  ;;  %v417_v60 = vadd.f32 %v568_v53, %v415_v57 }
  0x71   : > { %v651_v58 = vpop.eup %650  ;;  %v266_v59 = vsel %vm246_vm0, %v649_v56, 0.0 }
  0x72   : > { %v653_v61 = vpop.eup %652  ;;  %v267_v62 = vsel %vm246_vm0, %v651_v58, 0.0  ;;  %569 = vst [vmem:[%s992_s30 + $0x8] sm:$0xf] %v417_v60 }
  0x73   : > { %v655_v63 = vpop.eup %654  ;;  %v268_v0 = vadd.f32 %v267_v62, %v266_v59  ;;  %v269_v1 = vsel %vm246_vm0, %v653_v61, 0.0 }
  0x74   : > { %v271_v2 = vsel %vm246_vm0, %v655_v63, 0.0 }
  0x75   : > { %v270_v3 = vadd.f32 %v269_v1, %v268_v0 }
  0x77   : > { %v272_v4 = vadd.f32 %v271_v2, %v270_v3 }
  0x79   : > { %656 = vrcp.f32 %v272_v4 }
  0x83   : > { %v657_v5 = vpop.eup %656 }
  0x84   : > { %v274_v7 = vmul.f32 %v657_v5, %v272_v4 }
  0x86   : > { %v275_v8 = vsub.f32 2.0, %v274_v7 }
  0x88   : > { %v276_v9 = vmul.f32 %v657_v5, %v275_v8 }
  0x8a   : > { %v277_v10 = vmul.f32 %v649_v56, %v276_v9  ;;  %v278_v11 = vmul.f32 %v651_v58, %v276_v9  ;;  %v279_v13 = vmul.f32 %v653_v61, %v276_v9  ;;  %v280_v16 = vmul.f32 %v655_v63, %v276_v9 }
  0x8c   : > { %v294_v17 = vmul.f32 %v997_v6, %v277_v10  ;;  %v295_v18 = vmul.f32 %v1003_v12, %v278_v11  ;;  %v296_v19 = vmul.f32 %v1005_v14, %v279_v13  ;;  %v297_v20 = vmul.f32 %v1007_v15, %v280_v16 }
  0x8d   : > { %v341_v21 = vsel %vm246_vm0, %v277_v10, 0.0  ;;  %v348_v22 = vsel %vm246_vm0, %v278_v11, 0.0  ;;  %v355_v23 = vsel %vm246_vm0, %v279_v13, 0.0  ;;  %v362_v24 = vsel %vm246_vm0, %v280_v16, 0.0  ;;  %v293_v10 = vld [vmem:[%s992_s30] sm:$0xf] }
  0x8e   : > { %v298_v25 = vsel %vm246_vm0, %v294_v17, 0.0  ;;  %v305_v26 = vsel %vm246_vm0, %v295_v18, 0.0  ;;  %v312_v6 = vsel %vm246_vm0, %v296_v19, 0.0  ;;  %v319_v12 = vsel %vm246_vm0, %v297_v20, 0.0  ;;  %v566_v16 = vld [vmem:[%s992_s30 + $0x4] sm:$0xf] }
  0x8f   : > { %v299_v27 = vrot.slane %v298_v25, 4  ;;  %v306_v14 = vrot.slane %v305_v26, 4  ;;  %v313_v28 = vrot.slane %v312_v6, 4  ;;  %v320_v15 = vrot.slane %v319_v12, 4 }
  0x90   : > { %v342_v29 = vrot.slane %v341_v21, 4  ;;  %v349_v30 = vrot.slane %v348_v22, 4  ;;  %v356_v31 = vrot.slane %v355_v23, 4  ;;  %v363_v32 = vrot.slane %v362_v24, 4 }
  0x91   : > { %v300_v33 = vadd.f32 %v299_v27, %v298_v25  ;;  %v307_v34 = vadd.f32 %v306_v14, %v305_v26  ;;  %v314_v35 = vadd.f32 %v313_v28, %v312_v6  ;;  %v321_v36 = vadd.f32 %v320_v15, %v319_v12 }
  0x92   : > { %v343_v37 = vadd.f32 %v342_v29, %v341_v21  ;;  %v350_v38 = vadd.f32 %v349_v30, %v348_v22  ;;  %v357_v39 = vadd.f32 %v356_v31, %v355_v23  ;;  %v364_v40 = vadd.f32 %v363_v32, %v362_v24 }
  0x93   : > { %v301_v41 = vrot.slane %v300_v33, 2  ;;  %v308_v42 = vrot.slane %v307_v34, 2  ;;  %v315_v43 = vrot.slane %v314_v35, 2  ;;  %v322_v44 = vrot.slane %v321_v36, 2 }
  0x94   : > { %v344_v45 = vrot.slane %v343_v37, 2  ;;  %v351_v46 = vrot.slane %v350_v38, 2  ;;  %v358_v47 = vrot.slane %v357_v39, 2  ;;  %v365_v48 = vrot.slane %v364_v40, 2 }
  0x95   : > { %v302_v49 = vadd.f32 %v301_v41, %v300_v33  ;;  %v309_v50 = vadd.f32 %v308_v42, %v307_v34  ;;  %v316_v51 = vadd.f32 %v315_v43, %v314_v35  ;;  %v323_v52 = vadd.f32 %v322_v44, %v321_v36 }
  0x96   : > { %v345_v53 = vadd.f32 %v344_v45, %v343_v37  ;;  %v352_v54 = vadd.f32 %v351_v46, %v350_v38  ;;  %v359_v55 = vadd.f32 %v358_v47, %v357_v39  ;;  %v366_v56 = vadd.f32 %v365_v48, %v364_v40 }
  0x97   : > { %v303_v57 = vrot.slane %v302_v49, 1  ;;  %v310_v58 = vrot.slane %v309_v50, 1  ;;  %v317_v59 = vrot.slane %v316_v51, 1  ;;  %v324_v60 = vrot.slane %v323_v52, 1 }
  0x98   : > { %v346_v61 = vrot.slane %v345_v53, 1  ;;  %v353_v62 = vrot.slane %v352_v54, 1  ;;  %v360_v63 = vrot.slane %v359_v55, 1  ;;  %v367_v0 = vrot.slane %v366_v56, 1 }
  0x99   : > { %v304_v1 = vadd.f32 %v303_v57, %v302_v49  ;;  %v311_v2 = vadd.f32 %v310_v58, %v309_v50  ;;  %v318_v3 = vadd.f32 %v317_v59, %v316_v51  ;;  %v325_v4 = vadd.f32 %v324_v60, %v323_v52 }
  0x9a   : > { %v347_v5 = vadd.f32 %v346_v61, %v345_v53  ;;  %v354_v7 = vadd.f32 %v353_v62, %v352_v54  ;;  %v361_v8 = vadd.f32 %v360_v63, %v359_v55  ;;  %v368_v9 = vadd.f32 %v367_v0, %v366_v56 }
  0x9b   : > { %v331_v11 = vsel %vm330_vm5, %v311_v2, %v304_v1 }
  0x9c   : > { %v333_v13 = vsel %vm332_vm6, %v318_v3, %v331_v11  ;;  %v373_v17 = vsel %vm330_vm5, %v354_v7, %v347_v5 }
  0x9d   : > { %v335_v18 = vsel %vm334_vm7, %v325_v4, %v333_v13  ;;  %v374_v19 = vsel %vm332_vm6, %v361_v8, %v373_v17 }
  0x9e   : > { %v337_v20 = vadd.f32 %v335_v18, %v293_v10  ;;  %v375_v21 = vsel %vm334_vm7, %v368_v9, %v374_v19 }
  0x9f   : > { %v377_v22 = vadd.f32 %v566_v16, %v375_v21 }
  0xa0   : > { %338 = vst [vmem:[%s992_s30] sm:$0xf] %v337_v20 }
  0xa1   : > { %567 = vst [vmem:[%s992_s30 + $0x4] sm:$0xf] %v377_v22 }
  0xa2   : > { %731 = shalt.err (!%p728_p9)
}
  0xa3   : > { %s732_s20 = scalar_lea.hbm %s1051_s29, 192  ;;  %s736_s5 = scalar_lea.hbm %s1106_s2, 384 }
  0xa4   : > { %p733_p1 = scmp.ne.s32.totalorder %s1051_s29, %s732_s20  ;;  %p737_p5 = scmp.lt.u32.totalorder %s1051_s29, %s1106_s2 }
  0xa5   : > { %p738_p13 = scmp.lt.u32.totalorder %s736_s5, %s732_s20  ;;  %p740_p8 = scmp.lt.u32.totalorder %s732_s20, %s1051_s29 }
  0xa6   : > { %p734_p6 = pnand %p733_p1, %p1118_p0 }
  0xa7   : > { %p739_p3 = por %p738_p13, %p737_p5 }
  0xa8   : > { %p735_p2 = pneg %p734_p6 }
  0xa9   : > { %p741_p11 = por %p740_p8, %p739_p3 }
  0xab   : > { %p742_p4 = pnand %p741_p11, %p735_p2 }
  0xad   : > { %745 = shalt.err (!%p742_p4)
}
  0xae   : > { %s812_s26 = smov 64   ;;  %s813_s30 = smov 4  }
  0xaf   : > { %580 = dma.vmem_to_hbm [thread:$0]  (%p1118_p0), %s1053_s27, 192, %s1051_s29, %s420_s3, %s812_s26, %s812_s26, %s813_s30  }
  0xb0 PF: > { %s450_s21 = sand.u32 1, %s784_s9   ;;  %p1119_p7 = scmp.ne.s32.totalorder %s1112_s24, 0 }
  0xb1   : > { %p1120_p10 = scmp.ge.s32.totalorder %s804_s14, 2  ;;  %s451_s28 = scalar_lea.sflag [#allocation4], %s450_s21 }
  0xb3   : > { %p590_p12 = pnand %p1120_p10, %p1119_p7 }
  0xb5   : > { %779 = dma.done.wait (!%p590_p12), %s451_s28, 192  }
  0xb6   : > { %781 = vsyncadd (!%p590_p12), %s451_s28, 4294967104  ;;  %s21_s14 = sadd.s32 1, %s804_s14   ;;  %s1121_s9 = smov %s788_s10 }
  0xb7   : > { %p18_p9 = scmp.ge.s32.totalorder %s21_s14, 4   ;;  %s1122_s10 = smov %s792_s11 }
  0xb8   : > { %s1123_s11 = smov %s885_s23  ;;  %s1124_s12 = smov %s800_s13 }
  0xb9   : > { %s1125_s13 = smov %s1127_s17  ;;  %20 = sbr.rel (!%p18_p9) target bundleno = 8 (0x8), region = 92 }
  0xc0   :  { %456 = vsyncpa [#allocation3], 1 }
  0xc1   :  { %458 = vsyncpa [#allocation3 + $0x1], 1 }
  0xc2   :  { %459 = vsyncpa [#allocation6], 1 }
  0xc3   :  { %461 = vsyncpa [#allocation6 + $0x1], 1 }
  0xc4   :  { %462 = vsyncpa [#allocation4], 1 }
  0xc5   :  { %464 = vsyncpa [#allocation4 + $0x1], 1 }

</bundles_post_ra>
